<compile_context>
chip_gen: v7x
topology: tpu7x:2x2x1
jax: 0.10.0
libtpu: 0.0.40
codegen_flags: <defaults>
</compile_context>

<pallas_src>
import functools

import jax
import jax.numpy as jnp
from jax.experimental import pallas as pl
from jax.experimental.pallas import tpu as pltpu


def _atomwise_kernel(x_ref, idx_ref, w1_ref, b1_ref, out_ref, *,
                     n_total, tiles_per_core):
    """Per-tile: h = silu(x @ w1 + b1); acc[M, H+1] += onehot @ [h | valid]."""
    c = pl.program_id(0)          # core-split index ("parallel")
    i = pl.program_id(1)          # atom-tile index within this core ("arbitrary")
    tile_rows = x_ref.shape[0]

    # Zero this core's partial accumulator on its first tile.
    @pl.when(i == 0)
    def _init():
        out_ref[...] = jnp.zeros_like(out_ref)

    # ---- Dense layer 1 + SiLU on this atom tile (MXU + EUP) -----------------
    x = x_ref[...]                                                   # [T, n_in]
    h = jnp.dot(x, w1_ref[...], preferred_element_type=jnp.float32)  # [T, H] f32
    h = h + b1_ref[...]
    h = h * jax.lax.logistic(h)                                      # SiLU

    # ---- mask rows past the end of the atom array ---------------------------
    # Covers (a) the ragged last tile (x is NOT padded) and (b) a fully
    # out-of-range tile on the second core when the tile count is odd (its
    # block index is clamped in the index_map, so it re-reads valid data that
    # must not be double counted).  Select (not multiply) so NaN/Inf garbage
    # in out-of-bounds rows cannot propagate.
    tile_global = c * tiles_per_core + i
    limit = n_total - tile_global * tile_rows                        # scalar
    row = jax.lax.broadcasted_iota(jnp.int32, (tile_rows, 1), 0)
    valid = row < limit                                              # [T, 1]
    h = jnp.where(valid, h, 0.0)
    # Append the validity column: its segment sum is the per-molecule atom
    # count, used to apply b2 exactly once per (real) atom in the epilogue.
    h_aug = jnp.concatenate([h, valid.astype(jnp.float32)], axis=1)  # [T, H+1]

    # ---- segment sum via one-hot matmul (exact in f32) ----------------------
    # (M,1) iota broadcast against the (1,T) idx row; garbage idx values in the
    # ragged tail are neutralised because their h_aug rows are already zero.
    idx = idx_ref[...]                                               # [1, T] int32
    m_col = jax.lax.broadcasted_iota(jnp.int32, (out_ref.shape[0], 1), 0)
    onehot = (idx == m_col).astype(jnp.float32)                      # [M, T]
    out_ref[...] += jnp.dot(onehot, h_aug, preferred_element_type=jnp.float32)


def _make_block_spec(block_shape, index_map, n_buffers):
    """BlockSpec with optional N-deep buffering; falls back if unsupported."""
    if n_buffers > 2 and hasattr(pl, "Buffered"):
        try:
            return pl.BlockSpec(block_shape, index_map,
                                pipeline_mode=pl.Buffered(n_buffers))
        except TypeError:
            pass
    return pl.BlockSpec(block_shape, index_map)


def atomwise_forward(inputs, params, *, n_molecules=None, n_out=None,
                     aggregation_mode="sum", output_key="y",
                     tile_n=2048, num_core_splits=2):
    """Pallas implementation of Atomwise.forward (aggregated 'sum'/'avg' path).

    inputs: dict with
      'scalar_representation' : f32/bf16 [N_atoms, n_in]   (bf16 halves HBM traffic)
      'idx_m'                 : i32 [N_atoms]   (molecule index per atom, sorted)
      'n_atoms'               : i32 [n_molecules]   (only read for 'avg')
    params: 'w1' [n_in, hidden], 'b1' [hidden], 'w2' [hidden, n_out], 'b2' [n_out]
    n_molecules: static Python int (pass it; deriving from idx_m breaks jit).
    Note: for 'avg', a molecule with n_atoms == 0 yields inf/nan (matches ref).
    """
    assert aggregation_mode in ("sum", "avg"), aggregation_mode
    x = inputs["scalar_representation"]
    idx_m = inputs["idx_m"].astype(jnp.int32)

    n_total, n_in = x.shape
    hidden = params["w1"].shape[1]
    if n_out is None:
        n_out = params["w2"].shape[1]

    if n_molecules is None:
        # Matches torch `int(idx_m[-1]) + 1`, but forces a host sync; pass
        # n_molecules statically when calling under jax.jit.
        n_molecules = int(idx_m[-1]) + 1
    maxm = int(n_molecules)

    # ---- tiling over the atom axis (no padding, no copies of x) -------------
    if n_total <= tile_n:
        tile_n = n_total                 # single full-array block (no alignment needed)
        num_tiles = 1
    else:
        tile_n = max(128, (int(tile_n) // 128) * 128)   # lane/sublane aligned
        # Cap tile so (up to triple-buffered) x stays a few MiB of VMEM.
        budget = 8 << 20
        per_row = 3 * n_in * x.dtype.itemsize
        cap = max(128, (budget // max(per_row, 1)) // 128 * 128)
        tile_n = min(tile_n, cap)
        num_tiles = -(-n_total // tile_n)

    num_splits = max(1, min(int(num_core_splits), num_tiles))   # 2 -> uses both v7x TCs
    tiles_per_core = -(-num_tiles // num_splits)
    n_buffers = 3 if tiles_per_core >= 3 else 2

    idx2d = idx_m.reshape(1, n_total)                 # free reshape, no copy
    w1 = params["w1"].astype(x.dtype)                 # match x dtype for the MXU
    b1 = params["b1"].reshape(1, hidden).astype(jnp.float32)

    last_block = num_tiles - 1
    x_map = lambda c, i: (jnp.minimum(c * tiles_per_core + i, last_block), 0)
    idx_map = lambda c, i: (0, jnp.minimum(c * tiles_per_core + i, last_block))

    kernel = functools.partial(_atomwise_kernel, n_total=n_total,
                               tiles_per_core=tiles_per_core)

    # Advisory cost estimate for XLA's scheduler.
    flops = 2 * n_total * n_in * hidden + 2 * maxm * n_total * (hidden + 1)
    bytes_accessed = (n_total * (n_in * x.dtype.itemsize + 4)
                      + n_in * hidden * w1.dtype.itemsize + hidden * 4
                      + num_splits * maxm * (hidden + 1) * 4)
    cost = pl.CostEstimate(flops=int(flops), transcendentals=int(n_total * hidden),
                           bytes_accessed=int(bytes_accessed))

    acc = pl.pallas_call(
        kernel,
        out_shape=jax.ShapeDtypeStruct((num_splits, maxm, hidden + 1), jnp.float32),
        grid_spec=pltpu.PrefetchScalarGridSpec(
            num_scalar_prefetch=0,
            grid=(num_splits, tiles_per_core),
            in_specs=[
                _make_block_spec((tile_n, n_in), x_map, n_buffers),   # x: pipelined
                _make_block_spec((1, tile_n), idx_map, n_buffers),    # idx: pipelined
                pl.BlockSpec((n_in, hidden), lambda c, i: (0, 0)),    # w1: resident
                pl.BlockSpec((1, hidden), lambda c, i: (0, 0)),       # b1: resident
            ],
            # Output block = this core's partial accumulator; resident across
            # the inner (reduction) axis.
            out_specs=pl.BlockSpec((None, maxm, hidden + 1), lambda c, i: (c, 0, 0)),
        ),
        compiler_params=pltpu.CompilerParams(
            dimension_semantics=("parallel", "arbitrary"),
        ),
        cost_estimate=cost,
    )(x, idx2d, w1, b1)

    # ---- tiny epilogue in plain JAX (M x (hidden+1) values) -----------------
    acc = jnp.sum(acc, axis=0)                        # combine core partials [M, H+1]
    h_sum = acc[:, :hidden]                           # segment-summed hidden activations
    count = acc[:, hidden:]                           # per-molecule atom count
    w2 = params["w2"].astype(jnp.float32)
    b2 = params["b2"].reshape(1, n_out).astype(jnp.float32)
    y = h_sum @ w2 + count * b2                       # == segment_sum(h @ w2 + b2)
    if aggregation_mode == "avg":
        y = y / inputs["n_atoms"].astype(jnp.float32)[:, None]
    if n_out == 1:
        y = jnp.squeeze(y, -1)                        # torch.squeeze(y, -1) semantics

    out = dict(inputs)
    out[output_key] = y
    return out


def _reference_forward(inputs, params, *, n_molecules, n_out=1,
                       aggregation_mode="sum"):
    """Pure-JAX reference matching the PyTorch semantics (f32)."""
    x = inputs["scalar_representation"].astype(jnp.float32)
    idx_m = inputs["idx_m"]
    h = x @ params["w1"].astype(jnp.float32) + params["b1"].astype(jnp.float32)
    h = jax.nn.silu(h)
    y = h @ params["w2"].astype(jnp.float32) + params["b2"].astype(jnp.float32)
    y = jax.ops.segment_sum(y, idx_m, num_segments=n_molecules)
    if aggregation_mode == "avg":
        y = y / inputs["n_atoms"].astype(jnp.float32)[:, None]
    if n_out == 1:
        y = jnp.squeeze(y, -1)
    return y


def _make_case(key, n_per_mol, n_in, hidden, n_out):
    n_total = sum(n_per_mol)
    k1, k2, k3, k4, k5 = jax.random.split(key, 5)
    x = jax.random.normal(k1, (n_total, n_in), dtype=jnp.float32)
    idx_m = jnp.concatenate(
        [jnp.full((n,), i, dtype=jnp.int32) for i, n in enumerate(n_per_mol)]
    )
    n_atoms = jnp.array(n_per_mol, dtype=jnp.int32)
    params = {
        "w1": jax.random.normal(k2, (n_in, hidden), dtype=jnp.float32) / jnp.sqrt(n_in),
        "b1": jax.random.normal(k3, (hidden,), dtype=jnp.float32) * 0.01,
        "w2": jax.random.normal(k4, (hidden, n_out), dtype=jnp.float32) / jnp.sqrt(hidden),
        "b2": jax.random.normal(k5, (n_out,), dtype=jnp.float32) * 0.01,
    }
    inputs = {"scalar_representation": x, "idx_m": idx_m, "n_atoms": n_atoms}
    return inputs, params


if __name__ == "__main__":
    key = jax.random.PRNGKey(0)
    k_a, k_b, k_c = jax.random.split(key, 3)

    # ---- Case 1: 3 molecules, 24 atoms, single full-array tile; sum & avg ---
    n_in, hidden, n_out = 32, 16, 1      # n_hidden=None, n_layers=2 -> hidden=n_in//2
    n_per_mol = [6, 10, 8]
    inputs, params = _make_case(k_a, n_per_mol, n_in, hidden, n_out)
    maxm = len(n_per_mol)
    for mode in ("sum", "avg"):
        out = atomwise_forward(inputs, params, n_molecules=maxm,
                               aggregation_mode=mode, output_key="y")
        y = jax.block_until_ready(out["y"])
        y_ref = _reference_forward(inputs, params, n_molecules=maxm, n_out=n_out,
                                   aggregation_mode=mode)
        assert y.shape == (maxm,), y.shape
        assert jnp.allclose(y, y_ref, rtol=1e-5, atol=1e-5), (mode, y, y_ref)

    # ---- Case 2: 7 molecules, 300 atoms, multi-tile (tile_n=128), ragged tail,
    #      odd tile count -> exercises the clamped fully-OOB tile on core 1 ----
    n_per_mol2 = [40, 37, 51, 44, 29, 56, 43]
    n_out2 = 2
    inputs2, params2 = _make_case(k_b, n_per_mol2, n_in, hidden, n_out2)
    maxm2 = len(n_per_mol2)
    out2 = atomwise_forward(inputs2, params2, n_molecules=maxm2,
                            aggregation_mode="sum", tile_n=128)
    y2 = jax.block_until_ready(out2["y"])
    y2_ref = _reference_forward(inputs2, params2, n_molecules=maxm2, n_out=n_out2,
                                aggregation_mode="sum")
    assert y2.shape == (maxm2, n_out2), y2.shape
    assert jnp.allclose(y2, y2_ref, rtol=1e-4, atol=1e-4), (y2, y2_ref)

    # ---- Case 3: upstream hands in a bf16 representation (no wrapper copies) -
    inputs3 = dict(inputs2)
    inputs3["scalar_representation"] = inputs2["scalar_representation"].astype(jnp.bfloat16)
    out3 = atomwise_forward(inputs3, params2, n_molecules=maxm2,
                            aggregation_mode="sum", tile_n=128)
    y3 = jax.block_until_ready(out3["y"])
    assert jnp.allclose(y3, y2_ref, rtol=2e-2, atol=2e-2), (y3, y2_ref)

    # ---- Case 4: 11 molecules, 1571 atoms, 13 tiles -> triple-buffered x,
    #      odd-tile core split, ragged last tile, 'avg' aggregation -----------
    n_per_mol4 = [137, 93, 211, 64, 180, 155, 149, 102, 176, 158, 146]
    n_in4, hidden4, n_out4 = 64, 32, 3
    inputs4, params4 = _make_case(k_c, n_per_mol4, n_in4, hidden4, n_out4)
    maxm4 = len(n_per_mol4)
    out4 = atomwise_forward(inputs4, params4, n_molecules=maxm4,
                            aggregation_mode="avg", tile_n=128)
    y4 = jax.block_until_ready(out4["y"])
    y4_ref = _reference_forward(inputs4, params4, n_molecules=maxm4, n_out=n_out4,
                                aggregation_mode="avg")
    assert y4.shape == (maxm4, n_out4), y4.shape
    assert jnp.allclose(y4, y4_ref, rtol=1e-3, atol=1e-3), (y4, y4_ref)

    print("KERNEL_OK")
</pallas_src>

<mosaic_0001>
module attributes {stable_mosaic.version = 11 : i64} {
  func.func @_atomwise_kernel(%arg0: i32, %arg1: i32, %arg2: memref<24x32xf32, #tpu.memory_space<vmem>>, %arg3: memref<1x24xi32, #tpu.memory_space<vmem>>, %arg4: memref<32x16xf32, #tpu.memory_space<vmem>>, %arg5: memref<1x16xf32, #tpu.memory_space<vmem>>, %arg6: memref<1x3x17xf32, #tpu.memory_space<vmem>>) attributes {dimension_semantics = [#tpu.dimension_semantics<parallel>, #tpu.dimension_semantics<arbitrary>], iteration_bounds = array<i64: 1, 1>, scalar_prefetch = 0 : i64, scratch_operands = 0 : i64, tpu.core_type = #tpu.core_type<tc>, window_params = [{transform_indices = @transform_0, window_bounds = array<i64: 24, 32>}, {transform_indices = @transform_1, window_bounds = array<i64: 1, 24>}, {pipeline_mode = #tpu.pipeline_mode<synchronous>, transform_indices = @transform_2, window_bounds = array<i64: 32, 16>}, {pipeline_mode = #tpu.pipeline_mode<synchronous>, transform_indices = @transform_3, window_bounds = array<i64: 1, 16>}, {transform_indices = @transform_4, window_bounds = array<i64: 1, 3, 17>}]} {
    %c0_i32 = arith.constant 0 : i32
    %0 = arith.cmpi eq, %arg1, %c0_i32 : i32
    %1 = arith.extui %0 : i1 to i32
    %c0_i32_0 = arith.constant 0 : i32
    %2 = arith.cmpi ne, %1, %c0_i32_0 : i32
    scf.if %2 {
      %cst_18 = arith.constant 0.000000e+00 : f32
      %43 = vector.broadcast %cst_18 : f32 to vector<3x17xf32>
      %c0_19 = arith.constant 0 : index
      %c0_20 = arith.constant 0 : index
      %c0_21 = arith.constant 0 : index
      %44 = vector.load %arg6[%c0_19, %c0_20, %c0_21] : memref<1x3x17xf32, #tpu.memory_space<vmem>>, vector<1x3x17xf32>
      %45 = vector.shape_cast %44 : vector<1x3x17xf32> to vector<3x17xf32>
      %46 = vector.shape_cast %43 : vector<3x17xf32> to vector<1x3x17xf32>
      tpu.vector_store %arg6[%c0_19, %c0_20, %c0_21], %46 {strides = array<i32>} : memref<1x3x17xf32, #tpu.memory_space<vmem>>, vector<1x3x17xf32>,
    } else {
    }
    %c0 = arith.constant 0 : index
    %c0_1 = arith.constant 0 : index
    %3 = vector.load %arg2[%c0, %c0_1] : memref<24x32xf32, #tpu.memory_space<vmem>>, vector<24x32xf32>
    %c0_2 = arith.constant 0 : index
    %c0_3 = arith.constant 0 : index
    %4 = vector.load %arg4[%c0_2, %c0_3] : memref<32x16xf32, #tpu.memory_space<vmem>>, vector<32x16xf32>
    %cst = arith.constant dense<0.000000e+00> : vector<24x16xf32>
    %5 = tpu.matmul %3, %4, %cst {dimension_numbers = #tpu.dot_dimension_numbers<[1], [0], [0], [1], [0, 0, 1, 1], [], []>} : vector<24x32xf32>, vector<32x16xf32>, vector<24x16xf32> -> vector<24x16xf32>
    %c0_4 = arith.constant 0 : index
    %c0_5 = arith.constant 0 : index
    %6 = vector.load %arg5[%c0_4, %c0_5] : memref<1x16xf32, #tpu.memory_space<vmem>>, vector<1x16xf32>
    %7 = vector.broadcast %6 : vector<1x16xf32> to vector<24x16xf32>
    %8 = arith.addf %5, %7 : vector<24x16xf32>
    %9 = arith.negf %8 : vector<24x16xf32>
    %10 = math.exp %9 : vector<24x16xf32>
    %cst_6 = arith.constant 1.000000e+00 : f32
    %11 = vector.broadcast %cst_6 : f32 to vector<24x16xf32>
    %12 = arith.addf %11, %10 : vector<24x16xf32>
    %13 = arith.divf %11, %12 : vector<24x16xf32>
    %14 = arith.mulf %8, %13 : vector<24x16xf32>
    %c1_i32 = arith.constant 1 : i32
    %15 = arith.muli %arg0, %c1_i32 : i32
    %16 = arith.addi %15, %arg1 : i32
    %c24_i32 = arith.constant 24 : i32
    %17 = arith.muli %16, %c24_i32 : i32
    %c24_i32_7 = arith.constant 24 : i32
    %18 = arith.subi %c24_i32_7, %17 : i32
    %19 = tpu.iota {dimensions = array<i32: 0>} : vector<24x1xi32>
    %20 = vector.broadcast %18 : i32 to vector<24x1xi32>
    %21 = arith.cmpi slt, %19, %20 : vector<24x1xi32>
    %cst_8 = arith.constant 0.000000e+00 : f32
    %22 = vector.shape_cast %21 : vector<24x1xi1> to vector<24x1xi1>
    %23 = vector.broadcast %22 : vector<24x1xi1> to vector<24x16xi1>
    %24 = vector.broadcast %cst_8 : f32 to vector<24x16xf32>
    %25 = arith.select %23, %14, %24 : vector<24x16xi1>, vector<24x16xf32>
    %26 = arith.extui %21 : vector<24x1xi1> to vector<24x1xi32>
    %27 = arith.sitofp %26 : vector<24x1xi32> to vector<24x1xf32>
    %28 = tpu.concatenate %25, %27 in 1 : vector<24x16xf32>, vector<24x1xf32> -> vector<24x17xf32>
    %c0_9 = arith.constant 0 : index
    %c0_10 = arith.constant 0 : index
    %29 = vector.load %arg3[%c0_9, %c0_10] : memref<1x24xi32, #tpu.memory_space<vmem>>, vector<1x24xi32>
    %30 = tpu.iota {dimensions = array<i32: 0>} : vector<3x1xi32>
    %31 = vector.broadcast %29 : vector<1x24xi32> to vector<3x24xi32>
    %32 = vector.broadcast %30 : vector<3x1xi32> to vector<3x24xi32>
    %33 = arith.cmpi eq, %31, %32 : vector<3x24xi32>
    %34 = arith.extui %33 : vector<3x24xi1> to vector<3x24xi32>
    %35 = arith.sitofp %34 : vector<3x24xi32> to vector<3x24xf32>
    %c0_11 = arith.constant 0 : index
    %c0_12 = arith.constant 0 : index
    %c0_13 = arith.constant 0 : index
    %36 = vector.load %arg6[%c0_11, %c0_12, %c0_13] : memref<1x3x17xf32, #tpu.memory_space<vmem>>, vector<1x3x17xf32>
    %37 = vector.shape_cast %36 : vector<1x3x17xf32> to vector<3x17xf32>
    %cst_14 = arith.constant dense<0.000000e+00> : vector<3x17xf32>
    %38 = tpu.matmul %35, %28, %cst_14 {dimension_numbers = #tpu.dot_dimension_numbers<[1], [0], [0], [1], [0, 0, 1, 1], [], []>} : vector<3x24xf32>, vector<24x17xf32>, vector<3x17xf32> -> vector<3x17xf32>
    %39 = arith.addf %37, %38 : vector<3x17xf32>
    %c0_15 = arith.constant 0 : index
    %c0_16 = arith.constant 0 : index
    %c0_17 = arith.constant 0 : index
    %40 = vector.load %arg6[%c0_15, %c0_16, %c0_17] : memref<1x3x17xf32, #tpu.memory_space<vmem>>, vector<1x3x17xf32>
    %41 = vector.shape_cast %40 : vector<1x3x17xf32> to vector<3x17xf32>
    %42 = vector.shape_cast %39 : vector<3x17xf32> to vector<1x3x17xf32>
    tpu.vector_store %arg6[%c0_15, %c0_16, %c0_17], %42 {strides = array<i32>} : memref<1x3x17xf32, #tpu.memory_space<vmem>>, vector<1x3x17xf32>,
    return
  }
  func.func @transform_0(%arg0: i32, %arg1: i32) -> (i32, i32) {
    %c1_i32 = arith.constant 1 : i32
    %0 = arith.muli %arg0, %c1_i32 : i32
    %1 = arith.addi %0, %arg1 : i32
    %c0_i32 = arith.constant 0 : i32
    %2 = arith.minsi %1, %c0_i32 : i32
    %c0_i32_0 = arith.constant 0 : i32
    %c0_i32_1 = arith.constant 0 : i32
    return %2, %c0_i32_0 : i32, i32
  }
  func.func @transform_1(%arg0: i32, %arg1: i32) -> (i32, i32) {
    %c1_i32 = arith.constant 1 : i32
    %0 = arith.muli %arg0, %c1_i32 : i32
    %1 = arith.addi %0, %arg1 : i32
    %c0_i32 = arith.constant 0 : i32
    %2 = arith.minsi %1, %c0_i32 : i32
    %c0_i32_0 = arith.constant 0 : i32
    %c0_i32_1 = arith.constant 0 : i32
    return %c0_i32_0, %2 : i32, i32
  }
  func.func @transform_2(%arg0: i32, %arg1: i32) -> (i32, i32) {
    %c0_i32 = arith.constant 0 : i32
    %c0_i32_0 = arith.constant 0 : i32
    %c0_i32_1 = arith.constant 0 : i32
    return %c0_i32, %c0_i32_0 : i32, i32
  }
  func.func @transform_3(%arg0: i32, %arg1: i32) -> (i32, i32) {
    %c0_i32 = arith.constant 0 : i32
    %c0_i32_0 = arith.constant 0 : i32
    %c0_i32_1 = arith.constant 0 : i32
    return %c0_i32, %c0_i32_0 : i32, i32
  }
  func.func @transform_4(%arg0: i32, %arg1: i32) -> (i32, i32, i32) {
    %c0_i32 = arith.constant 0 : i32
    %c0_i32_0 = arith.constant 0 : i32
    %c0_i32_1 = arith.constant 0 : i32
    return %arg0, %c0_i32, %c0_i32_0 : i32, i32, i32
  }
}

</mosaic_0001>

<bundles_post_ra>
// kernel: tpu_custom_call.1
= control target key start
LH: loop header
LB: loop body
LE: loop exit
PB: predicated region body
PF: predicated region fallthrough
CT: control target
= control target key end

     0   :  { %v401_v0 = vmov 0.0|0.0   ;;  %vm402_vm0 = vmmov 0   ;;  %v403_v4 = vmov 0.0   ;;  %vm93_vm1 = vcmask 261120   ;;  %s478_s2 = inlined_call_operand.vmem [shape: f32[32,16], index: 2, kind: input, shape index: {}]   ;;  %s479_s0 = inlined_call_operand.vmem [shape: f32[24,32], index: 0, kind: input, shape index: {}]   ;;  %s480_s4 = inlined_call_operand.vmem [shape: f32[1,3,17], index: 4, kind: output, shape index: {}]   ;;  %s481_s3 = inlined_call_operand.vmem [shape: f32[1,16], index: 3, kind: input, shape index: {}]   ;;  %s482_s1 = inlined_call_operand.vmem [shape: s32[1,24], index: 1, kind: input, shape index: {}]  }
   0x1   :  { %377 = vmatprep.subr.bf16.mxu0 %v401_v0  ;;  %v82_v1 = vld [vmem:[%s478_s2] sm:$0xff]  ;;  %v83_v2 = vld [vmem:[%s478_s2 + $0x8] sm:$0xff]  ;;  %v84_v3 = vld [vmem:[%s478_s2 + $0x10] sm:$0xff]  ;;  %359 = vmatprep.mubr.msk.f32.mxu0 %vm402_vm0, %v403_v4  ;;  %vm77_vm2 = vcmask 133120   ;;  %v207_v31 = vlaneseq  ;;  %vm227_vm3 = vcmask 130048   ;;  %vm240_vm5 = vcmask 195584  }
   0x2   :  { %v378_v5 = vpack.c.bf16 %v83_v2, %v82_v1  ;;  %v85_v6 = vld [vmem:[%s478_s2 + $0x18] sm:$0xff]  ;;  %383 = vmatprep.subr.bf16.mxu1 %v401_v0  ;;  %374 = vmatprep.mubr.msk.f32.mxu1 %vm402_vm0, %v403_v4  ;;  %v79_v8 = vld [vmem:[%s479_s0] sm:$0xff]  ;;  %v80_v9 = vld [vmem:[%s479_s0 + $0x8] sm:$0xff]  ;;  %78 = vst.msk [vmem:[%s480_s4] sm:$0x7] %vm77_vm2, %v403_v4 }
   0x3   :  { %v381_v7 = vpack.c.bf16 %v85_v6, %v84_v3  ;;  %v81_v10 = vld [vmem:[%s479_s0 + $0x10] sm:$0xff]  ;;  %v330_v11 = vld [vmem:[%s481_s3] ss:$0 sm:$0xff]  ;;  %v208_v35 = vshrl.u32 %v207_v31, 7 }
   0x4   :  { %379 = vmatpush3.bf16.msra.mxu0 %v378_v5  ;;  %v337_v36 = vld [vmem:[%s482_s1] ss:$0 sm:$0xff] }
   0x5   :  { %380 = vmatprep.subr.bf16.mxu0 %v401_v0  ;;  %vm236_vm4 = vcmp.eq.s32.totalorder %v337_v36, %v208_v35 }
   0x6   :  { %v338_v42 = vsel %vm236_vm4, 1.0, %v403_v4 }
   0x8   :  { %382 = vmatpush3.bf16.msra.mxu0 %v381_v7 }
   0x9   :  { %v239_v44 = vld [vmem:[%s480_s4] sm:$0x7] }
   0xb   :  { %360 = vmatmul.mubr.msk.f32.vlgmr.msra.gmra.mrb[0].mxu0 %vm93_vm1, %v79_v8 }
   0xc   :  { %362 = vmatprep.mubr.msk.f32.mxu0 %vm402_vm0, %v403_v4 }
   0xf   :  { %363 = vmatmul.mubr.msk.f32.gmra.mrb[2].mxu0 %vm93_vm1, %v80_v9 }
  0x10   :  { %365 = vmatprep.mubr.msk.f32.mxu0 %vm402_vm0, %v403_v4 }
  0x13   :  { %366 = vmatmul.mubr.msk.f32.gmra.mrb[4].mxu0 %vm93_vm1, %v81_v10 }
  0xde   :  { %v169_v12 = vpop.f32.mrb[0].mxu0 }
  0xdf   :  { %v170_v13 = vadd.f32 %v330_v11, %v169_v12  ;;  %v361_v14 = vpop.f32.mrb[1].mxu0 }
  0xe1   :  { %v334_v15 = vmul.f32 -1.442695, %v170_v13 }
  0xe2   :  { %v174_v16 = vpop.f32.mrb[2].mxu0 }
  0xe3   :  { %389 = vpow2.f32 %v334_v15  ;;  %v175_v17 = vadd.f32 %v330_v11, %v174_v16  ;;  %v364_v18 = vpop.f32.mrb[3].mxu0 }
  0xe5   :  { %v335_v19 = vmul.f32 -1.442695, %v175_v17 }
  0xe6   :  { %v179_v20 = vpop.f32.mrb[4].mxu0 }
  0xe7   :  { %391 = vpow2.f32 %v335_v19  ;;  %v180_v21 = vadd.f32 %v330_v11, %v179_v20  ;;  %v367_v22 = vpop.f32.mrb[5].mxu0 }
  0xe9   :  { %v336_v23 = vmul.f32 -1.442695, %v180_v21 }
  0xeb   :  { %393 = vpow2.f32 %v336_v23 }
  0xed   :  { %v390_v24 = vpop.eup %389 }
  0xee   :  { %v192_v25 = vadd.f32 1.0, %v390_v24 }
  0xf0   :  { %395 = vrcp.f32 %v192_v25 }
  0xf1   :  { %v392_v26 = vpop.eup %391 }
  0xf2   :  { %v193_v27 = vadd.f32 1.0, %v392_v26 }
  0xf4   :  { %397 = vrcp.f32 %v193_v27 }
  0xf5   :  { %v394_v28 = vpop.eup %393 }
  0xf6   :  { %v194_v29 = vadd.f32 1.0, %v394_v28 }
  0xf8   :  { %399 = vrcp.f32 %v194_v29 }
  0xfa   :  { %v396_v30 = vpop.eup %395 }
  0xfb   :  { %v201_v32 = vmul.f32 %v396_v30, %v170_v13 }
  0xfd   :  { %v228_v37 = vsel %vm227_vm3, %v201_v32, 1.0 }
  0xfe   :  { %v398_v33 = vpop.eup %397 }
  0xff   :  { %v202_v34 = vmul.f32 %v398_v33, %v175_v17 }
 0x101   :  { %v229_v38 = vsel %vm227_vm3, %v202_v34, 1.0 }
 0x102   :  { %v400_v39 = vpop.eup %399  ;;  %v384_v40 = vpack.c.bf16 %v229_v38, %v228_v37 }
 0x103   :  { %v203_v41 = vmul.f32 %v400_v39, %v180_v21 }
 0x104   :  { %385 = vmatpush3.bf16.msra.mxu1 %v384_v40 }
 0x105   :  { %372 = vmatprep.subr.mxu1 %v403_v4  ;;  %v230_v43 = vsel %vm227_vm3, %v203_v41, 1.0 }
 0x108   :  { %373 = vmatpush3.msra.mxu1 %v230_v43 }
 0x109   :  { %375 = vmatmul.mubr.msk.f32.vlgmr.msra.gmra.mrb[0].mxu1 %vm240_vm5, %v338_v42 }
 0x1dc   :  { %v310_v45 = vpop.f32.mrb[0].mxu1 }
 0x1dd   :  { %v314_v46 = vadd.f32 %v310_v45, %v239_v44  ;;  %v376_v47 = vpop.f32.mrb[1].mxu1 }
 0x1df   :  { %316 = vst.msk [vmem:[%s480_s4] sm:$0x7] %vm77_vm2, %v314_v46 }

</bundles_post_ra>
